<compile_context>
chip_gen: v7x
topology: tpu7x:2x2x1
jax: 0.10.0
libtpu: 0.0.40
codegen_flags: <defaults>
</compile_context>

<pallas_src>
import functools

import jax
import jax.numpy as jnp
from jax.experimental import pallas as pl
from jax.experimental.pallas import tpu as pltpu


def _kd_loss_kernel(teacher_ref, student_ref, out_ref, *,
                    batch, classes, block_b, need_mask):
    t = teacher_ref[...].astype(jnp.float32)   # [TB, C] teacher logits
    s = student_ref[...].astype(jnp.float32)   # [TB, C] student logits

    if need_mask:
        # Rows past the true batch (partial last tile) -> neutralize inputs so
        # all math stays finite, then zero their contributions.
        row = jax.lax.broadcasted_iota(jnp.int32, (block_b, 1), 0)
        gid = pl.program_id(0) * block_b + row
        valid = gid < batch                      # [TB, 1] bool
        t = jnp.where(valid, t, 0.0)
        s = jnp.where(valid, s, 0.0)

    # ---- student log-softmax pieces (log_q = s_shift - s_lse, not materialized)
    s_max = jnp.max(s, axis=1, keepdims=True)
    s_shift = s - s_max
    s_lse = jnp.log(jnp.sum(jnp.exp(s_shift), axis=1, keepdims=True))

    # ---- teacher softmax pieces (no [TB,C] divide, no materialized p)
    t_max = jnp.max(t, axis=1, keepdims=True)
    t_shift = t - t_max
    t_exp = jnp.exp(t_shift)
    t_sum = jnp.sum(t_exp, axis=1, keepdims=True)
    log_t_sum = jnp.log(t_sum)

    # KL row: sum_j p_j (log p_j - log q_j) = r / t_sum - log(t_sum)
    #   with r = sum_j t_exp_j * (t_shift_j - log q_j)
    r = jnp.sum(t_exp * (t_shift - s_shift + s_lse), axis=1, keepdims=True)
    # Only TB reciprocals per tile; exact (approx=False) keeps tight numerics.
    inv_t_sum = pl.reciprocal(t_sum, approx=False)
    kl_row = r * inv_t_sum - log_t_sum                     # [TB, 1]

    # hard label = first argmax of teacher; CE row = -log_q[label] = s_lse - s_shift[label]
    col = jax.lax.broadcasted_iota(jnp.int32, (block_b, classes), 1)
    idx = jnp.min(jnp.where(t == t_max, col, classes), axis=1, keepdims=True)
    picked = jnp.sum(jnp.where(col == idx, s_shift, 0.0), axis=1, keepdims=True)
    ce_row = s_lse - picked                                # [TB, 1]

    if need_mask:
        valid_f = valid.astype(jnp.float32)
        kl_row = kl_row * valid_f
        ce_row = ce_row * valid_f

    kl_part = jnp.sum(kl_row)   # un-normalized partial sums for this tile
    ce_part = jnp.sum(ce_row)

    # Lane-dense (1,8,128) output block per grid step:
    #   [0,0,0] = partial KL sum, [0,0,1] = partial CE sum, rest 0.
    sub = jax.lax.broadcasted_iota(jnp.int32, (1, 8, 128), 1)
    lane = jax.lax.broadcasted_iota(jnp.int32, (1, 8, 128), 2)
    out_ref[...] = jnp.where(
        (sub == 0) & (lane == 0), kl_part,
        jnp.where((sub == 0) & (lane == 1), ce_part, 0.0))


def kd_loss(teacher_out, student_out, alpha: float = 0.9, *, block_b=None):
    """Pallas implementation of KDLoss.forward([[teacher_out], [student_out]])."""
    assert teacher_out.shape == student_out.shape and teacher_out.ndim == 2
    B, C = teacher_out.shape
    itemsize = max(jnp.dtype(teacher_out.dtype).itemsize,
                   jnp.dtype(student_out.dtype).itemsize)

    if block_b is None:
        # 2 inputs x 2 pipeline buffers x TB x C x itemsize <= ~24 MiB (v7x-safe)
        budget_bytes = 24 * 1024 * 1024
        per_row_bytes = 4 * C * itemsize
        tb_budget = max(8, budget_bytes // per_row_bytes)
        if B <= tb_budget:
            tb = B                                   # full-extent block: always legal
        else:
            align = {4: 8, 2: 16, 1: 32}.get(itemsize, 8)
            tb = max(align, (tb_budget // align) * align)
    else:
        tb = min(int(block_b), B)

    num_tiles = pl.cdiv(B, tb)
    need_mask = (B % tb) != 0

    kernel = functools.partial(
        _kd_loss_kernel, batch=B, classes=C, block_b=tb, need_mask=need_mask)

    parts = pl.pallas_call(
        kernel,
        out_shape=jax.ShapeDtypeStruct((num_tiles, 8, 128), jnp.float32),
        grid=(num_tiles,),
        in_specs=[
            pl.BlockSpec((tb, C), lambda i: (i, 0)),
            pl.BlockSpec((tb, C), lambda i: (i, 0)),
        ],
        out_specs=pl.BlockSpec((1, 8, 128), lambda i: (i, 0, 0)),
        compiler_params=pltpu.CompilerParams(
            dimension_semantics=("parallel",),
            vmem_limit_bytes=48 * 1024 * 1024,
        ),
    )(teacher_out, student_out)

    kl_sum = jnp.sum(parts[:, 0, 0])
    ce_sum = jnp.sum(parts[:, 0, 1])
    inv_b = 1.0 / B
    # KLDivLoss(batchmean) = sum / B ; CrossEntropyLoss = mean over batch.
    return alpha * (kl_sum * inv_b) + (1.0 - alpha) * (ce_sum * inv_b)


def _kd_loss_ref(teacher_out, student_out, alpha: float = 0.9):
    """Pure-JAX reference for sanity checking."""
    log_q = jax.nn.log_softmax(student_out.astype(jnp.float32), axis=1)
    p = jax.nn.softmax(teacher_out.astype(jnp.float32), axis=1)
    log_p = jax.nn.log_softmax(teacher_out.astype(jnp.float32), axis=1)
    batch = teacher_out.shape[0]
    kl = jnp.sum(p * (log_p - log_q)) / batch
    labels = jnp.argmax(teacher_out, axis=1)
    ce = -jnp.mean(jnp.take_along_axis(log_q, labels[:, None], axis=1))
    return alpha * kl + (1.0 - alpha) * ce


if __name__ == "__main__":
    key = jax.random.PRNGKey(0)

    # Case 1: small logits (batch=8, classes=32), single tile.
    k_t, k_s, k_t2, k_s2 = jax.random.split(key, 4)
    B, C = 8, 32
    teacher_out = jax.random.normal(k_t, (B, C), dtype=jnp.float32)
    student_out = jax.random.normal(k_s, (B, C), dtype=jnp.float32)

    loss = kd_loss(teacher_out, student_out, alpha=0.9)
    loss = jax.block_until_ready(loss)
    ref = _kd_loss_ref(teacher_out, student_out, alpha=0.9)
    assert jnp.allclose(loss, ref, rtol=1e-5, atol=1e-5), (loss, ref)

    # Case 2: force the tiled / masked path (batch=20, tile=8 -> 3 grid steps,
    # last one partial) to exercise the grid, pipelining and row masking.
    B2, C2 = 20, 128
    teacher2 = jax.random.normal(k_t2, (B2, C2), dtype=jnp.float32)
    student2 = jax.random.normal(k_s2, (B2, C2), dtype=jnp.float32)

    loss2 = kd_loss(teacher2, student2, alpha=0.9, block_b=8)
    loss2 = jax.block_until_ready(loss2)
    ref2 = _kd_loss_ref(teacher2, student2, alpha=0.9)
    assert jnp.allclose(loss2, ref2, rtol=1e-5, atol=1e-5), (loss2, ref2)

    print("KERNEL_OK")
</pallas_src>

<mosaic_0001>
module attributes {stable_mosaic.version = 11 : i64} {
  func.func @_kd_loss_kernel(%arg0: i32, %arg1: memref<8x32xf32, #tpu.memory_space<vmem>>, %arg2: memref<8x32xf32, #tpu.memory_space<vmem>>, %arg3: memref<1x8x128xf32, #tpu.memory_space<vmem>>) attributes {dimension_semantics = [#tpu.dimension_semantics<parallel>], iteration_bounds = array<i64: 1>, scalar_prefetch = 0 : i64, scratch_operands = 0 : i64, tpu.core_type = #tpu.core_type<tc>, window_params = [{transform_indices = @transform_0, window_bounds = array<i64: 8, 32>}, {transform_indices = @transform_1, window_bounds = array<i64: 8, 32>}, {transform_indices = @transform_2, window_bounds = array<i64: 1, 8, 128>}]} {
    %c0 = arith.constant 0 : index
    %c0_0 = arith.constant 0 : index
    %0 = vector.load %arg1[%c0, %c0_0] : memref<8x32xf32, #tpu.memory_space<vmem>>, vector<8x32xf32>
    %c0_1 = arith.constant 0 : index
    %c0_2 = arith.constant 0 : index
    %1 = vector.load %arg2[%c0_1, %c0_2] : memref<8x32xf32, #tpu.memory_space<vmem>>, vector<8x32xf32>
    %cst = arith.constant dense<0xFF800000> : vector<8xf32>
    %2 = vector.multi_reduction <maximumf>, %1, %cst [1] : vector<8x32xf32> to vector<8xf32>
    %3 = vector.shape_cast %2 : vector<8xf32> to vector<8x1xf32>
    %4 = vector.broadcast %3 : vector<8x1xf32> to vector<8x32xf32>
    %5 = arith.subf %1, %4 : vector<8x32xf32>
    %6 = math.exp %5 : vector<8x32xf32>
    %cst_3 = arith.constant dense<0.000000e+00> : vector<8xf32>
    %7 = vector.multi_reduction <add>, %6, %cst_3 [1] : vector<8x32xf32> to vector<8xf32>
    %8 = vector.shape_cast %7 : vector<8xf32> to vector<8x1xf32>
    %9 = math.log %8 : vector<8x1xf32>
    %cst_4 = arith.constant dense<0xFF800000> : vector<8xf32>
    %10 = vector.multi_reduction <maximumf>, %0, %cst_4 [1] : vector<8x32xf32> to vector<8xf32>
    %11 = vector.shape_cast %10 : vector<8xf32> to vector<8x1xf32>
    %12 = vector.broadcast %11 : vector<8x1xf32> to vector<8x32xf32>
    %13 = arith.subf %0, %12 : vector<8x32xf32>
    %14 = math.exp %13 : vector<8x32xf32>
    %cst_5 = arith.constant dense<0.000000e+00> : vector<8xf32>
    %15 = vector.multi_reduction <add>, %14, %cst_5 [1] : vector<8x32xf32> to vector<8xf32>
    %16 = vector.shape_cast %15 : vector<8xf32> to vector<8x1xf32>
    %17 = math.log %16 : vector<8x1xf32>
    %18 = arith.subf %13, %5 : vector<8x32xf32>
    %19 = vector.broadcast %9 : vector<8x1xf32> to vector<8x32xf32>
    %20 = arith.addf %18, %19 : vector<8x32xf32>
    %21 = arith.mulf %14, %20 : vector<8x32xf32>
    %cst_6 = arith.constant dense<0.000000e+00> : vector<8xf32>
    %22 = vector.multi_reduction <add>, %21, %cst_6 [1] : vector<8x32xf32> to vector<8xf32>
    %23 = vector.shape_cast %22 : vector<8xf32> to vector<8x1xf32>
    %24 = tpu.reciprocal %16 : vector<8x1xf32> -> vector<8x1xf32>
    %25 = arith.mulf %23, %24 : vector<8x1xf32>
    %26 = arith.subf %25, %17 : vector<8x1xf32>
    %27 = tpu.iota {dimensions = array<i32: 1>} : vector<8x32xi32>
    %28 = vector.broadcast %11 : vector<8x1xf32> to vector<8x32xf32>
    %29 = arith.cmpf oeq, %0, %28 : vector<8x32xf32>
    %c32_i32 = arith.constant 32 : i32
    %30 = vector.broadcast %c32_i32 : i32 to vector<8x32xi32>
    %31 = arith.select %29, %27, %30 : vector<8x32xi1>, vector<8x32xi32>
    %cst_7 = arith.constant dense<2147483647> : vector<8xi32>
    %32 = vector.multi_reduction <minsi>, %31, %cst_7 [1] : vector<8x32xi32> to vector<8xi32>
    %33 = vector.shape_cast %32 : vector<8xi32> to vector<8x1xi32>
    %34 = vector.broadcast %33 : vector<8x1xi32> to vector<8x32xi32>
    %35 = arith.cmpi eq, %27, %34 : vector<8x32xi32>
    %cst_8 = arith.constant 0.000000e+00 : f32
    %36 = vector.broadcast %cst_8 : f32 to vector<8x32xf32>
    %37 = arith.select %35, %5, %36 : vector<8x32xi1>, vector<8x32xf32>
    %cst_9 = arith.constant dense<0.000000e+00> : vector<8xf32>
    %38 = vector.multi_reduction <add>, %37, %cst_9 [1] : vector<8x32xf32> to vector<8xf32>
    %39 = vector.shape_cast %38 : vector<8xf32> to vector<8x1xf32>
    %40 = arith.subf %9, %39 : vector<8x1xf32>
    %41 = vector.shape_cast %26 : vector<8x1xf32> to vector<1x8x1xf32>
    %cst_10 = arith.constant dense<0.000000e+00> : vector<1xf32>
    %42 = vector.multi_reduction <add>, %41, %cst_10 [1, 2] : vector<1x8x1xf32> to vector<1xf32>
    %43 = vector.shape_cast %42 : vector<1xf32> to vector<1x1x1xf32>
    %44 = vector.extract %43[0, 0, 0] : f32 from vector<1x1x1xf32>
    %45 = vector.shape_cast %40 : vector<8x1xf32> to vector<1x8x1xf32>
    %cst_11 = arith.constant dense<0.000000e+00> : vector<1xf32>
    %46 = vector.multi_reduction <add>, %45, %cst_11 [1, 2] : vector<1x8x1xf32> to vector<1xf32>
    %47 = vector.shape_cast %46 : vector<1xf32> to vector<1x1x1xf32>
    %48 = vector.extract %47[0, 0, 0] : f32 from vector<1x1x1xf32>
    %49 = tpu.iota {dimensions = array<i32: 1>} : vector<1x8x128xi32>
    %50 = tpu.iota {dimensions = array<i32: 2>} : vector<1x8x128xi32>
    %c0_i32 = arith.constant 0 : i32
    %51 = vector.broadcast %c0_i32 : i32 to vector<1x8x128xi32>
    %52 = arith.cmpi eq, %49, %51 : vector<1x8x128xi32>
    %c0_i32_12 = arith.constant 0 : i32
    %53 = vector.broadcast %c0_i32_12 : i32 to vector<1x8x128xi32>
    %54 = arith.cmpi eq, %50, %53 : vector<1x8x128xi32>
    %55 = arith.andi %52, %54 : vector<1x8x128xi1>
    %c0_i32_13 = arith.constant 0 : i32
    %56 = vector.broadcast %c0_i32_13 : i32 to vector<1x8x128xi32>
    %57 = arith.cmpi eq, %49, %56 : vector<1x8x128xi32>
    %c1_i32 = arith.constant 1 : i32
    %58 = vector.broadcast %c1_i32 : i32 to vector<1x8x128xi32>
    %59 = arith.cmpi eq, %50, %58 : vector<1x8x128xi32>
    %60 = arith.andi %57, %59 : vector<1x8x128xi1>
    %cst_14 = arith.constant 0.000000e+00 : f32
    %61 = vector.broadcast %48 : f32 to vector<1x8x128xf32>
    %62 = vector.broadcast %cst_14 : f32 to vector<1x8x128xf32>
    %63 = arith.select %60, %61, %62 : vector<1x8x128xi1>, vector<1x8x128xf32>
    %64 = vector.broadcast %44 : f32 to vector<1x8x128xf32>
    %65 = arith.select %55, %64, %63 : vector<1x8x128xi1>, vector<1x8x128xf32>
    %c0_15 = arith.constant 0 : index
    %c0_16 = arith.constant 0 : index
    %c0_17 = arith.constant 0 : index
    %66 = vector.load %arg3[%c0_15, %c0_16, %c0_17] : memref<1x8x128xf32, #tpu.memory_space<vmem>>, vector<1x8x128xf32>
    tpu.vector_store %arg3[%c0_15, %c0_16, %c0_17], %65 {strides = array<i32>} : memref<1x8x128xf32, #tpu.memory_space<vmem>>, vector<1x8x128xf32>,
    return
  }
  func.func @transform_0(%arg0: i32) -> (i32, i32) {
    %c0_i32 = arith.constant 0 : i32
    %c0_i32_0 = arith.constant 0 : i32
    return %arg0, %c0_i32 : i32, i32
  }
  func.func @transform_1(%arg0: i32) -> (i32, i32) {
    %c0_i32 = arith.constant 0 : i32
    %c0_i32_0 = arith.constant 0 : i32
    return %arg0, %c0_i32 : i32, i32
  }
  func.func @transform_2(%arg0: i32) -> (i32, i32, i32) {
    %c0_i32 = arith.constant 0 : i32
    %c0_i32_0 = arith.constant 0 : i32
    %c0_i32_1 = arith.constant 0 : i32
    return %arg0, %c0_i32, %c0_i32_0 : i32, i32, i32
  }
}

</mosaic_0001>

<bundles_post_ra>
// kernel: tpu_custom_call.1
= control target key start
LH: loop header
LB: loop body
LE: loop exit
PB: predicated region body
PF: predicated region fallthrough
CT: control target
= control target key end

     0   :  { %7 = vsyncpa [#allocation3], 0  ;;  %s302_s0 = inlined_call_operand.hbm [shape: f32[8,32], index: 0, kind: input, shape index: {}]   ;;  %s303_s1 = inlined_call_operand.hbm [shape: f32[8,32], index: 1, kind: input, shape index: {}]   ;;  %s304_s2 = inlined_call_operand.hbm [shape: f32[1,8,128], index: 2, kind: output, shape index: {}]  }
   0x1   :  { %8 = vsyncpa [#allocation6], 0 }
   0x2   :  { %9 = vsyncpa [#allocation4], 0  ;;  %s233_s9 = smov [#allocation2]   ;;  %s234_s11 = smov [#allocation5]  }
   0x3   :  { %s16_s10 = sshll.u32 %s233_s9, 4  ;;  %s26_s12 = sshll.u32 %s234_s11, 4  ;;  %s17_s10 = int_to_ptr.vmem [resolvable:$true] %s16_s10  ;;  %s27_s12 = int_to_ptr.vmem [resolvable:$true] %s26_s12 }
   0x4   :  { %s161_s15 = scalar_lea.hbm %s302_s0, 128 }
   0x5   :  { %p162_p0 = scmp.ne.s32.totalorder %s302_s0, %s161_s15  ;;  %p165_p1 = scmp.lt.u32.totalorder %s161_s15, %s302_s0 }
   0x7   :  { %p167_p2 = pnand %p165_p1, %p162_p0 }
   0x9   :  { %170 = shalt.err (!%p167_p2)
}
   0xa   :  { %s171_s20 = scalar_lea.vmem %s17_s10, 128  ;;  %p176_p4 = scmp.lt.s32.totalorder %s17_s10, %s17_s10 }
   0xb   :  { %p172_p3 = scmp.ne.s32.totalorder %s17_s10, %s171_s20  ;;  %p177_p5 = scmp.lt.s32.totalorder %s171_s20, %s171_s20 }
   0xd   :  { %p178_p6 = por %p177_p5, %p176_p4 }
   0xf   :  { %p179_p7 = pnand %p178_p6, %p172_p3 }
  0x11   :  { %182 = shalt.err (!%p179_p7)
}
  0x12   :  { %19 = dma.hbm_to_vmem [thread:$0]  %s302_s0, 128, %s17_s10, [#allocation3]  }
  0x13   :  { %s183_s25 = scalar_lea.hbm %s303_s1, 128 }
  0x14   :  { %p184_p8 = scmp.ne.s32.totalorder %s303_s1, %s183_s25  ;;  %p187_p9 = scmp.lt.u32.totalorder %s183_s25, %s303_s1 }
  0x16   :  { %p189_p10 = pnand %p187_p9, %p184_p8 }
  0x18   :  { %192 = shalt.err (!%p189_p10)
}
  0x19   :  { %s193_s30 = scalar_lea.vmem %s27_s12, 128  ;;  %p198_p12 = scmp.lt.s32.totalorder %s27_s12, %s27_s12 }
  0x1a   :  { %p194_p11 = scmp.ne.s32.totalorder %s27_s12, %s193_s30  ;;  %p199_p13 = scmp.lt.s32.totalorder %s193_s30, %s193_s30 }
  0x1c   :  { %p200_p0 = por %p199_p13, %p198_p12 }
  0x1e   :  { %p201_p1 = pnand %p200_p0, %p194_p11 }
  0x20   :  { %204 = shalt.err (!%p201_p1)
}
  0x21   :  { %29 = dma.hbm_to_vmem [thread:$0]  %s303_s1, 128, %s27_s12, [#allocation6]  }
  0x22   :  { %227 = dma.done.wait [#allocation3], 128  }
  0x23   :  { %228 = vsyncadd [#allocation3], 4294967168 }
  0x24   :  { %229 = dma.done.wait [#allocation6], 128  }
  0x25   :  { %230 = vsyncadd [#allocation6], 4294967168  ;;  %vm38_vm0 = vcmask 261120   ;;  %v36_v0 = vld [vmem:[#allocation2] sm:$0xff]  ;;  %v37_v1 = vld [vmem:[#allocation5] sm:$0xff]  ;;  %v70_v4 = vlaneseq  ;;  %vm95_vm4 = vcmask 7168  }
  0x26   :  { %v50_v2 = vsel %vm38_vm0, %v36_v0, -inf  ;;  %v39_v3 = vsel %vm38_vm0, %v37_v1, -inf  ;;  %s235_s4 = smov [#allocation7]  }
  0x27   :  { %51 = vmax.xlane.f32.xlu0 %v50_v2  ;;  %v278_v5 = vand.u32 127, %v70_v4  ;;  %v117_v63 = vshrl.u32 %v70_v4, 7  ;;  %s134_s5 = sshll.u32 %s235_s4, 4  ;;  %s135_s5 = int_to_ptr.vmem [resolvable:$true] %s134_s5 }
  0x28   :  { %s205_s7 = scalar_lea.vmem %s135_s5, 128  ;;  %p210_p3 = scmp.lt.s32.totalorder %s135_s5, %s135_s5 }
  0x29   :  { %vm118_vm5 = vcmp.eq.s32.totalorder %v117_v63, 0  ;;  %vm121_vm6 = vcmp.eq.s32.totalorder %v278_v5, 1  ;;  %vm119_vm7 = vcmp.eq.s32.totalorder %v278_v5, 0  ;;  %p206_p2 = scmp.ne.s32.totalorder %s135_s5, %s205_s7  ;;  %p211_p4 = scmp.lt.s32.totalorder %s205_s7, %s205_s7 }
  0x2a   :  { %vm122_vm8 = vmand %vm118_vm5, %vm121_vm6 }
  0x2b   :  { %40 = vmax.xlane.f32.xlu0 %v39_v3  ;;  %vm120_vm9 = vmand %vm118_vm5, %vm119_vm7  ;;  %p212_p5 = por %p211_p4, %p210_p3 }
  0x2d   :  { %p213_p6 = pnand %p212_p5, %p206_p2 }
  0xb4   :  { %v52_v6 = vpop.xlane.xlu0 %51 }
  0xb5   :  { %vm72_vm1 = vcmp.eq.f32.partialorder %v36_v0, %v52_v6  ;;  %v53_v8 = vsub.f32 %v36_v0, %v52_v6 }
  0xb6   :  { %v73_v7 = vsel %vm72_vm1, %v278_v5, 32 }
  0xb7   :  { %v74_v9 = vsel %vm38_vm0, %v73_v7, 2147483647  ;;  %v54_v14 = vmul.f32 1.442695, %v53_v8 }
  0xb8   :  { %v41_v10 = vpop.xlane.xlu0 %40  ;;  %v76_v11 = vshra.s32 %v74_v9, 16  ;;  %v75_v20 = vand.u32 65535, %v74_v9 }
  0xb9   :  { %v42_v12 = vsub.f32 %v37_v1, %v41_v10 }
  0xba   :  { %v78_v13 = vcvt.s32.f32 %v76_v11  ;;  %v77_v22 = vcvt.s32.f32 %v75_v20 }
  0xbb   :  { %v43_v15 = vmul.f32 1.442695, %v42_v12  ;;  %v61_v26 = vsub.f32 %v53_v8, %v42_v12 }
  0xbc   :  { %79 = vmin.xlane.f32.xlu1 %v78_v13 }
  0xbd   :  { %151 = vpow2.f32 %v43_v15 }
  0xbe   :  { %153 = vpow2.f32 %v54_v14 }
  0xc7   :  { %v152_v16 = vpop.eup %151 }
  0xc8   :  { %v45_v17 = vsel %vm38_vm0, %v152_v16, 0.0  ;;  %v154_v18 = vpop.eup %153 }
  0xc9   :  { %46 = vadd.xlane.f32.xlu1 %v45_v17  ;;  %v56_v19 = vsel %vm38_vm0, %v154_v18, 0.0 }
  0xcd   :  { %57 = vadd.xlane.f32.xlu1 %v56_v19 }
 0x149   :  { %v80_v21 = vpop.xlane.xlu1 %79 }
 0x14a   :  { %vm81_vm2 = vcmp.eq.f32.partialorder %v78_v13, %v80_v21  ;;  %v86_v31 = vcvt.f32.s32 %v80_v21 }
 0x14b   :  { %v82_v23 = vsel %vm81_vm2, %v77_v22, inf }
 0x14c   :  { %83 = vmin.xlane.f32.xlu0 %v82_v23  ;;  %v87_v33 = vshll.u32 %v86_v31, 16 }
 0x156   :  { %v47_v24 = vpop.xlane.xlu1 %46 }
 0x157   :  { %155 = vlog2.f32 %v47_v24 }
 0x15a   :  { %v58_v38 = vpop.xlane.xlu1 %57 }
 0x15b   :  { %157 = vlog2.f32 %v58_v38 }
 0x15c   :  { %159 = vrcp.f32 %v58_v38 }
 0x161   :  { %v156_v25 = vpop.eup %155 }
 0x162   :  { %v49_v27 = vmul.f32 0.6931472, %v156_v25 }
 0x164   :  { %v62_v28 = vadd.f32 %v61_v26, %v49_v27 }
 0x165   :  { %v158_v39 = vpop.eup %157 }
 0x166   :  { %v63_v29 = vmul.f32 %v154_v18, %v62_v28  ;;  %v160_v40 = vpop.eup %159  ;;  %v60_v43 = vmul.f32 0.6931472, %v158_v39 }
 0x168   :  { %v64_v30 = vsel %vm38_vm0, %v63_v29, 0.0 }
 0x169   :  { %65 = vadd.xlane.f32.xlu0 %v64_v30 }
 0x1d9   :  { %v84_v32 = vpop.xlane.xlu0 %83 }
 0x1da   :  { %v85_v34 = vcvt.f32.s32 %v84_v32 }
 0x1dc   :  { %v88_v35 = vadd.s32 %v87_v33, %v85_v34 }
 0x1de   :  { %vm89_vm3 = vcmp.eq.s32.totalorder %v278_v5, %v88_v35 }
 0x1df   :  { %v90_v36 = vsel %vm89_vm3, %v42_v12, 0.0 }
 0x1e0   :  { %v91_v37 = vsel %vm38_vm0, %v90_v36, 0.0 }
 0x1e1   :  { %92 = vadd.xlane.f32.xlu1 %v91_v37 }
 0x1f6   :  { %v66_v41 = vpop.xlane.xlu0 %65 }
 0x1f7   :  { %v68_v42 = vmul.f32 %v160_v40, %v66_v41 }
 0x1f9   :  { %v69_v44 = vsub.f32 %v68_v42, %v60_v43 }
 0x1fb   :  { %v96_v45 = vsel %vm95_vm4, %v69_v44, 0.0 }
 0x1fc   :  { %97 = vadd.xlane.f32.xlu0 %v96_v45 }
 0x26e   :  { %v93_v46 = vpop.xlane.xlu1 %92 }
 0x26f   :  { %v94_v47 = vsub.f32 %v49_v27, %v93_v46 }
 0x271   :  { %v106_v48 = vsel %vm95_vm4, %v94_v47, 0.0 }
 0x272   :  { %107 = vadd.xlane.f32.xlu1 %v106_v48 }
 0x289   :  { %v98_v49 = vpop.xlane.xlu0 %97 }
 0x28a   :  { %v99_v50 = vrot.slane %v98_v49, 4 }
 0x28c   :  { %v100_v51 = vadd.f32 %v99_v50, %v98_v49 }
 0x28e   :  { %v101_v52 = vrot.slane %v100_v51, 2 }
 0x290   :  { %v102_v53 = vadd.f32 %v101_v52, %v100_v51 }
 0x292   :  { %v103_v54 = vrot.slane %v102_v53, 1 }
 0x294   :  { %v104_v55 = vadd.f32 %v103_v54, %v102_v53 }
 0x296   :  { %144 = vpush %v104_v55 }
 0x2c7   :  { %s145_s1 = spop %144 }
 0x2c8   :  { %v125_v1 = vstv %s145_s1 }
 0x2ff   :  { %v108_v56 = vpop.xlane.xlu1 %107 }
 0x300   :  { %v109_v57 = vrot.slane %v108_v56, 4 }
 0x302   :  { %v110_v58 = vadd.f32 %v109_v57, %v108_v56 }
 0x304   :  { %v111_v59 = vrot.slane %v110_v58, 2 }
 0x306   :  { %v112_v60 = vadd.f32 %v111_v59, %v110_v58 }
 0x308   :  { %v113_v61 = vrot.slane %v112_v60, 1 }
 0x30a   :  { %v114_v62 = vadd.f32 %v113_v61, %v112_v60 }
 0x30c   :  { %146 = vpush %v114_v62 }
 0x33d   :  { %s147_s6 = spop %146 }
 0x33e   :  { %v123_v0 = vstv %s147_s6 }
 0x33f   :  { %v124_v2 = vsel %vm122_vm8, %v123_v0, 0.0 }
 0x340   :  { %v126_v3 = vsel %vm120_vm9, %v125_v1, %v124_v2 }
 0x341   :  { %127 = vst [vmem:[#allocation7] sm:$0xff] %v126_v3 }
 0x342   :  { %216 = shalt.err (!%p213_p6)
}
 0x343   :  { %s217_s10 = scalar_lea.hbm %s304_s2, 128 }
 0x344   :  { %p218_p7 = scmp.ne.s32.totalorder %s304_s2, %s217_s10  ;;  %p221_p8 = scmp.lt.u32.totalorder %s217_s10, %s304_s2 }
 0x346   :  { %p223_p9 = pnand %p221_p8, %p218_p7 }
 0x348   :  { %226 = shalt.err (!%p223_p9)
}
 0x349   :  { %137 = dma.vmem_to_hbm [thread:$0]  %s135_s5, 128, %s304_s2, [#allocation4]  }
 0x34a   :  { %231 = dma.done.wait [#allocation4], 128  }
 0x34b   :  { %232 = vsyncadd [#allocation4], 4294967168 }
 0x34c   :  { %141 = vsyncpa [#allocation3], 1 }
 0x34d   :  { %142 = vsyncpa [#allocation6], 1 }
 0x34e   :  { %143 = vsyncpa [#allocation4], 1 }

</bundles_post_ra>
